<compile_context>
chip_gen: v7x
topology: tpu7x:2x2x1
jax: 0.10.0
libtpu: 0.0.40
codegen_flags: <defaults>
</compile_context>

<pallas_src>
import math
import functools

import jax
import jax.numpy as jnp
from jax.experimental import pallas as pl
from jax.experimental.pallas import tpu as pltpu

_MASK_VALUE = -1e30


def _flash_attn_kernel(q_ref, k_ref, v_ref, o_ref, m_sc, l_sc, acc_sc,
                       *, d, hpb, kv_tile, n_real, exp_dtype):
    """One (batch, head-block, q-tile, kv-tile) step of flash attention.

    q_ref:  (1, tq, dh) bf16 (pre-scaled by 1/sqrt(d))
    k_ref / v_ref: (1, tk, dh) bf16        o_ref: (1, tq, dh)
    m_sc / l_sc:   (hpb, tq, 1) f32 running max / running sum
    acc_sc:        (tq, dh) f32 output accumulator (dh = hpb * d, lane-dense)
    """
    kv = pl.program_id(3)

    @pl.when(kv == 0)
    def _init():
        m_sc[...] = jnp.full_like(m_sc, -jnp.inf)
        l_sc[...] = jnp.zeros_like(l_sc)
        acc_sc[...] = jnp.zeros_like(acc_sc)

    q = q_ref[0]          # (tq, dh) bf16
    k = k_ref[0]          # (tk, dh) bf16
    v = v_ref[0]          # (tk, dh) bf16
    tq = acc_sc.shape[0]

    # Key-side padding mask (only emitted when the wrapper padded N).
    col_ok = None
    if n_real is not None:
        col_ids = kv * kv_tile + jax.lax.broadcasted_iota(
            jnp.int32, (1, kv_tile), 1)
        col_ok = col_ids < n_real

    for j in range(hpb):                       # static unroll over packed heads
        sl = slice(j * d, (j + 1) * d)
        qj = q[:, sl]
        kj = k[:, sl]
        vj = v[:, sl]

        # Scores (tq, tk): contract the head dim of Q and K directly on the MXU
        # (no in-kernel K transpose), f32 accumulation.
        s = jax.lax.dot_general(
            qj, kj, (((1,), (1,)), ((), ())),
            preferred_element_type=jnp.float32)

        if col_ok is not None:
            s = jnp.where(col_ok, s, _MASK_VALUE)

        m_prev = m_sc[j]
        m_new = jnp.maximum(m_prev, jnp.max(s, axis=-1, keepdims=True))
        alpha = jnp.exp(m_prev - m_new)                    # f32, only tq elems
        # Big tq*tk exponent: bf16 on v6e/v7x (bf16 EUP), f32 on v5e.
        p = jnp.exp((s - m_new).astype(exp_dtype))
        l_sc[j] = alpha * l_sc[j] + jnp.sum(
            p, axis=-1, keepdims=True, dtype=jnp.float32)
        p_mm = p if p.dtype == jnp.bfloat16 else p.astype(jnp.bfloat16)
        pv = jnp.dot(p_mm, vj, preferred_element_type=jnp.float32)
        acc_sc[:, sl] = alpha * acc_sc[:, sl] + pv
        m_sc[j] = m_new

    @pl.when(kv == pl.num_programs(3) - 1)
    def _finalize():
        inv_l = pl.reciprocal(l_sc[...], approx=True)      # EUP; (hpb, tq, 1)
        if hpb == 1:
            mult = jnp.broadcast_to(inv_l[0], acc_sc.shape)
        else:
            mult = jnp.concatenate(
                [jnp.broadcast_to(inv_l[j], (tq, d)) for j in range(hpb)],
                axis=-1)                                   # (tq, dh)
        # Single lane-dense store of the whole head-block.
        o_ref[0] = (acc_sc[...] * mult).astype(o_ref.dtype)


def _seq_tile(n, max_tile):
    """Largest tile <= max_tile that divides n with (8,128)-friendly granularity."""
    for g in (128, 8):
        if n % g == 0:
            t = min(max_tile, n)
            t -= t % g
            if t == 0:
                return n
            while n % t != 0:
                t -= g
            return t
    return n


def _heads_per_block(head_num, d, n):
    """Heads packed per C-block so the block's last dim is lane-dense (>=128)."""
    base = None
    for cand in range(1, head_num + 1):
        if head_num % cand == 0 and (cand * d) % 128 == 0:
            base = cand
            break
    if base is None:
        return head_num          # dh == C: full-extent last dim, always legal
    hpb = base
    if d <= 64 and n <= 512:
        # Tiny per-step work: pack more heads per block (up to dh=512) to
        # amortize the ~0.35us per-grid-step overhead and feed the MXU wider.
        for cand in range(base, head_num + 1):
            if (head_num % cand == 0 and (cand * d) % 128 == 0
                    and cand * d <= 512):
                hpb = cand
    return hpb


def _kv_blockspec(block_shape, index_map, deep_buffer):
    """K/V BlockSpec; request 3-deep buffering on v5e (exposed-DMA mitigation)."""
    if deep_buffer and hasattr(pl, "Buffered"):
        try:
            return pl.BlockSpec(block_shape, index_map,
                                pipeline_mode=pl.Buffered(3))
        except TypeError:
            pass
    return pl.BlockSpec(block_shape, index_map)


def attention(query_layer, key_layer, value_layer, head_num,
              *, q_tile=1024, kv_tile=512):
    """Multi-head attention matching the PyTorch Attention.forward.

    query/key/value: (B, N, C) float32.  Returns (B, N, C) float32.
    """
    B, N, C = query_layer.shape
    H = head_num
    assert C % H == 0, "C must be divisible by head_num"
    d = C // H
    scale = 1.0 / math.sqrt(d)
    out_dtype = query_layer.dtype

    hpb = _heads_per_block(H, d, N)
    dh = hpb * d
    Hb = H // hpb

    # Generation detection (bf16 EUP on v6e/v7x; v5e keeps f32 exp + gets
    # deeper K/V buffering).
    try:
        kind = jax.devices()[0].device_kind.lower()
    except Exception:
        kind = ""
    use_bf16_exp = ("v6" in kind) or ("v7" in kind)
    is_v5e = ("v5" in kind) and (("lite" in kind) or ("v5e" in kind))

    # Ragged-N handling: small ragged N -> full-extent blocks (always legal);
    # large ragged N -> pad to a multiple of 128 and mask padded key columns.
    if N % 128 == 0 or N <= 512:
        Np, n_real = N, None
    else:
        Np = ((N + 127) // 128) * 128
        n_real = N

    if Np % 128 == 0:
        tq = _seq_tile(Np, q_tile)
        tk = _seq_tile(Np, kv_tile)
    else:
        tq = tk = Np

    # Wrapper-side bf16 cast halves Q/K/V HBM->VMEM DMA traffic; 1/sqrt(d) is
    # folded into the (already required) Q cast so nothing per-kv-step remains.
    q = (query_layer * scale).astype(jnp.bfloat16)
    k = key_layer.astype(jnp.bfloat16)
    v = value_layer.astype(jnp.bfloat16)
    if Np != N:
        pad = Np - N
        q = jnp.pad(q, ((0, 0), (0, pad), (0, 0)))
        k = jnp.pad(k, ((0, 0), (0, pad), (0, 0)))
        v = jnp.pad(v, ((0, 0), (0, pad), (0, 0)))

    grid = (B, Hb, Np // tq, Np // tk)

    q_spec = pl.BlockSpec((1, tq, dh), lambda b, h, qi, ki: (b, qi, h))
    o_spec = pl.BlockSpec((1, tq, dh), lambda b, h, qi, ki: (b, qi, h))
    kv_spec = _kv_blockspec((1, tk, dh), lambda b, h, qi, ki: (b, ki, h),
                            deep_buffer=is_v5e)

    kernel = functools.partial(
        _flash_attn_kernel, d=d, hpb=hpb, kv_tile=tk, n_real=n_real,
        exp_dtype=jnp.bfloat16 if use_bf16_exp else jnp.float32)

    out = pl.pallas_call(
        kernel,
        out_shape=jax.ShapeDtypeStruct((B, Np, C), out_dtype),
        grid_spec=pltpu.PrefetchScalarGridSpec(
            num_scalar_prefetch=0,
            grid=grid,
            in_specs=[q_spec, kv_spec, kv_spec],
            out_specs=o_spec,
            scratch_shapes=[
                pltpu.VMEM((hpb, tq, 1), jnp.float32),   # running max
                pltpu.VMEM((hpb, tq, 1), jnp.float32),   # running sum
                pltpu.VMEM((tq, dh), jnp.float32),       # output accumulator
            ],
        ),
        compiler_params=pltpu.CompilerParams(
            dimension_semantics=("parallel", "parallel", "parallel",
                                 "arbitrary"),
            # ~2x headroom over worst-case usage; safely under v7x's 64 MiB
            # physical VMEM, lifts v5e's 16 MiB scoped default.
            vmem_limit_bytes=32 * 1024 * 1024,
        ),
    )(q, k, v)

    if Np != N:
        out = out[:, :N, :]
    return out


def _reference(query_layer, key_layer, value_layer, head_num):
    B, N, C = query_layer.shape
    d = C // head_num

    def split(x):
        return x.reshape(B, N, head_num, d).transpose(0, 2, 1, 3)

    q, k, v = split(query_layer), split(key_layer), split(value_layer)
    s = jnp.einsum("bhnd,bhmd->bhnm", q, k) / math.sqrt(d)
    p = jax.nn.softmax(s, axis=-1)
    ctx = jnp.einsum("bhnm,bhmd->bhnd", p, v)
    return ctx.transpose(0, 2, 1, 3).reshape(B, N, C)


if __name__ == "__main__":
    root = jax.random.PRNGKey(0)
    keys = jax.random.split(root, 9)

    # 1) Small shape matching the PyTorch module's (B, N, C) inputs.
    B, N, C, head_num = 2, 8, 32, 4
    query = jax.random.normal(keys[0], (B, N, C), dtype=jnp.float32)
    key_l = jax.random.normal(keys[1], (B, N, C), dtype=jnp.float32)
    value = jax.random.normal(keys[2], (B, N, C), dtype=jnp.float32)
    out = jax.block_until_ready(attention(query, key_l, value, head_num))
    ref = _reference(query, key_l, value, head_num)
    assert out.shape == (B, N, C)
    assert jnp.allclose(out, ref, atol=5e-2, rtol=5e-2), "mismatch (small shape)"

    # 2) Aligned shape exercising the head-blocked lane-dense path (d=64).
    B2, N2, C2, head_num2 = 1, 256, 256, 4
    q2 = jax.random.normal(keys[3], (B2, N2, C2), dtype=jnp.float32)
    k2 = jax.random.normal(keys[4], (B2, N2, C2), dtype=jnp.float32)
    v2 = jax.random.normal(keys[5], (B2, N2, C2), dtype=jnp.float32)
    out2 = jax.block_until_ready(attention(q2, k2, v2, head_num2))
    ref2 = _reference(q2, k2, v2, head_num2)
    assert jnp.allclose(out2, ref2, atol=5e-2, rtol=5e-2), "mismatch (d=64 shape)"

    # 3) Large ragged N exercising the padded + masked multi-kv-tile path.
    B3, N3, C3, head_num3 = 1, 600, 128, 2
    q3 = jax.random.normal(keys[6], (B3, N3, C3), dtype=jnp.float32)
    k3 = jax.random.normal(keys[7], (B3, N3, C3), dtype=jnp.float32)
    v3 = jax.random.normal(keys[8], (B3, N3, C3), dtype=jnp.float32)
    out3 = jax.block_until_ready(attention(q3, k3, v3, head_num3))
    ref3 = _reference(q3, k3, v3, head_num3)
    assert out3.shape == (B3, N3, C3)
    assert jnp.allclose(out3, ref3, atol=5e-2, rtol=5e-2), "mismatch (ragged N)"

    print("KERNEL_OK")
</pallas_src>

<mosaic_0001>
module attributes {stable_mosaic.version = 11 : i64} {
  func.func @_flash_attn_kernel(%arg0: i32, %arg1: i32, %arg2: i32, %arg3: i32, %arg4: memref<1x8x32xbf16, #tpu.memory_space<vmem>>, %arg5: memref<1x8x32xbf16, #tpu.memory_space<vmem>>, %arg6: memref<1x8x32xbf16, #tpu.memory_space<vmem>>, %arg7: memref<1x8x32xf32, #tpu.memory_space<vmem>>, %arg8: memref<4x8x1xf32, #tpu.memory_space<vmem>>, %arg9: memref<4x8x1xf32, #tpu.memory_space<vmem>>, %arg10: memref<8x32xf32, #tpu.memory_space<vmem>>) attributes {dimension_semantics = [#tpu.dimension_semantics<parallel>, #tpu.dimension_semantics<parallel>, #tpu.dimension_semantics<parallel>, #tpu.dimension_semantics<arbitrary>], iteration_bounds = array<i64: 2, 1, 1, 1>, scalar_prefetch = 0 : i64, scratch_operands = 3 : i64, tpu.core_type = #tpu.core_type<tc>, window_params = [{transform_indices = @transform_0, window_bounds = array<i64: 1, 8, 32>}, {transform_indices = @transform_1, window_bounds = array<i64: 1, 8, 32>}, {transform_indices = @transform_2, window_bounds = array<i64: 1, 8, 32>}, {transform_indices = @transform_3, window_bounds = array<i64: 1, 8, 32>}]} {
    %c0_i32 = arith.constant 0 : i32
    %0 = arith.cmpi eq, %arg3, %c0_i32 : i32
    %1 = arith.extui %0 : i1 to i32
    %c0_i32_0 = arith.constant 0 : i32
    %2 = arith.cmpi ne, %1, %c0_i32_0 : i32
    scf.if %2 {
      %cst_84 = arith.constant 0xFF800000 : f32
      %144 = vector.broadcast %cst_84 : f32 to vector<4x8x1xf32>
      %c0_85 = arith.constant 0 : index
      %c0_86 = arith.constant 0 : index
      %c0_87 = arith.constant 0 : index
      %145 = vector.load %arg8[%c0_85, %c0_86, %c0_87] : memref<4x8x1xf32, #tpu.memory_space<vmem>>, vector<4x8x1xf32>
      tpu.vector_store %arg8[%c0_85, %c0_86, %c0_87], %144 {strides = array<i32>} : memref<4x8x1xf32, #tpu.memory_space<vmem>>, vector<4x8x1xf32>,
      %cst_88 = arith.constant 0.000000e+00 : f32
      %146 = vector.broadcast %cst_88 : f32 to vector<4x8x1xf32>
      %c0_89 = arith.constant 0 : index
      %c0_90 = arith.constant 0 : index
      %c0_91 = arith.constant 0 : index
      %147 = vector.load %arg9[%c0_89, %c0_90, %c0_91] : memref<4x8x1xf32, #tpu.memory_space<vmem>>, vector<4x8x1xf32>
      tpu.vector_store %arg9[%c0_89, %c0_90, %c0_91], %146 {strides = array<i32>} : memref<4x8x1xf32, #tpu.memory_space<vmem>>, vector<4x8x1xf32>,
      %cst_92 = arith.constant 0.000000e+00 : f32
      %148 = vector.broadcast %cst_92 : f32 to vector<8x32xf32>
      %c0_93 = arith.constant 0 : index
      %c0_94 = arith.constant 0 : index
      %149 = vector.load %arg10[%c0_93, %c0_94] : memref<8x32xf32, #tpu.memory_space<vmem>>, vector<8x32xf32>
      tpu.vector_store %arg10[%c0_93, %c0_94], %148 {strides = array<i32>} : memref<8x32xf32, #tpu.memory_space<vmem>>, vector<8x32xf32>,
    } else {
    }
    %c0 = arith.constant 0 : index
    %c0_1 = arith.constant 0 : index
    %c0_2 = arith.constant 0 : index
    %3 = vector.load %arg4[%c0, %c0_1, %c0_2] : memref<1x8x32xbf16, #tpu.memory_space<vmem>>, vector<1x8x32xbf16>
    %4 = vector.shape_cast %3 : vector<1x8x32xbf16> to vector<8x32xbf16>
    %c0_3 = arith.constant 0 : index
    %c0_4 = arith.constant 0 : index
    %c0_5 = arith.constant 0 : index
    %5 = vector.load %arg5[%c0_3, %c0_4, %c0_5] : memref<1x8x32xbf16, #tpu.memory_space<vmem>>, vector<1x8x32xbf16>
    %6 = vector.shape_cast %5 : vector<1x8x32xbf16> to vector<8x32xbf16>
    %c0_6 = arith.constant 0 : index
    %c0_7 = arith.constant 0 : index
    %c0_8 = arith.constant 0 : index
    %7 = vector.load %arg6[%c0_6, %c0_7, %c0_8] : memref<1x8x32xbf16, #tpu.memory_space<vmem>>, vector<1x8x32xbf16>
    %8 = vector.shape_cast %7 : vector<1x8x32xbf16> to vector<8x32xbf16>
    %9 = vector.extract_strided_slice %4 {offsets = [0, 0], sizes = [8, 8], strides = [1, 1]} : vector<8x32xbf16> to vector<8x8xbf16>
    %10 = vector.extract_strided_slice %6 {offsets = [0, 0], sizes = [8, 8], strides = [1, 1]} : vector<8x32xbf16> to vector<8x8xbf16>
    %11 = vector.extract_strided_slice %8 {offsets = [0, 0], sizes = [8, 8], strides = [1, 1]} : vector<8x32xbf16> to vector<8x8xbf16>
    %cst = arith.constant dense<0.000000e+00> : vector<8x8xf32>
    %12 = tpu.matmul %9, %10, %cst {dimension_numbers = #tpu.dot_dimension_numbers<[1], [1], [0], [0], [0, 0, 1, 0], [], []>} : vector<8x8xbf16>, vector<8x8xbf16>, vector<8x8xf32> -> vector<8x8xf32>
    %c0_9 = arith.constant 0 : index
    %c0_10 = arith.constant 0 : index
    %c0_11 = arith.constant 0 : index
    %13 = vector.load %arg8[%c0_9, %c0_10, %c0_11] : memref<4x8x1xf32, #tpu.memory_space<vmem>>, vector<1x8x1xf32>
    %14 = vector.shape_cast %13 : vector<1x8x1xf32> to vector<8x1xf32>
    %cst_12 = arith.constant dense<0xFF800000> : vector<8xf32>
    %15 = vector.multi_reduction <maximumf>, %12, %cst_12 [1] : vector<8x8xf32> to vector<8xf32>
    %16 = vector.shape_cast %15 : vector<8xf32> to vector<8x1xf32>
    %17 = arith.maximumf %14, %16 : vector<8x1xf32>
    %18 = arith.subf %14, %17 : vector<8x1xf32>
    %19 = math.exp %18 : vector<8x1xf32>
    %20 = vector.broadcast %17 : vector<8x1xf32> to vector<8x8xf32>
    %21 = arith.subf %12, %20 : vector<8x8xf32>
    %22 = math.exp %21 : vector<8x8xf32>
    %c0_13 = arith.constant 0 : index
    %c0_14 = arith.constant 0 : index
    %c0_15 = arith.constant 0 : index
    %23 = vector.load %arg9[%c0_13, %c0_14, %c0_15] : memref<4x8x1xf32, #tpu.memory_space<vmem>>, vector<1x8x1xf32>
    %24 = vector.shape_cast %23 : vector<1x8x1xf32> to vector<8x1xf32>
    %25 = arith.mulf %19, %24 : vector<8x1xf32>
    %cst_16 = arith.constant dense<0.000000e+00> : vector<8xf32>
    %26 = vector.multi_reduction <add>, %22, %cst_16 [1] : vector<8x8xf32> to vector<8xf32>
    %27 = vector.shape_cast %26 : vector<8xf32> to vector<8x1xf32>
    %28 = arith.addf %25, %27 : vector<8x1xf32>
    %c0_17 = arith.constant 0 : index
    %c0_18 = arith.constant 0 : index
    %c0_19 = arith.constant 0 : index
    %29 = vector.load %arg9[%c0_17, %c0_18, %c0_19] : memref<4x8x1xf32, #tpu.memory_space<vmem>>, vector<1x8x1xf32>
    %30 = vector.shape_cast %29 : vector<1x8x1xf32> to vector<8x1xf32>
    %31 = vector.shape_cast %28 : vector<8x1xf32> to vector<1x8x1xf32>
    tpu.vector_store %arg9[%c0_17, %c0_18, %c0_19], %31 {strides = array<i32>} : memref<4x8x1xf32, #tpu.memory_space<vmem>>, vector<1x8x1xf32>,
    %32 = arith.truncf %22 : vector<8x8xf32> to vector<8x8xbf16>
    %cst_20 = arith.constant dense<0.000000e+00> : vector<8x8xf32>
    %33 = tpu.matmul %32, %11, %cst_20 {dimension_numbers = #tpu.dot_dimension_numbers<[1], [0], [0], [1], [0, 0, 1, 1], [], []>} : vector<8x8xbf16>, vector<8x8xbf16>, vector<8x8xf32> -> vector<8x8xf32>
    %c0_21 = arith.constant 0 : index
    %c0_22 = arith.constant 0 : index
    %34 = vector.load %arg10[%c0_21, %c0_22] : memref<8x32xf32, #tpu.memory_space<vmem>>, vector<8x8xf32>
    %35 = vector.broadcast %19 : vector<8x1xf32> to vector<8x8xf32>
    %36 = arith.mulf %35, %34 : vector<8x8xf32>
    %37 = arith.addf %36, %33 : vector<8x8xf32>
    %c0_23 = arith.constant 0 : index
    %c0_24 = arith.constant 0 : index
    %38 = vector.load %arg10[%c0_23, %c0_24] : memref<8x32xf32, #tpu.memory_space<vmem>>, vector<8x8xf32>
    tpu.vector_store %arg10[%c0_23, %c0_24], %37 {strides = array<i32>} : memref<8x32xf32, #tpu.memory_space<vmem>>, vector<8x8xf32>,
    %c0_25 = arith.constant 0 : index
    %c0_26 = arith.constant 0 : index
    %c0_27 = arith.constant 0 : index
    %39 = vector.load %arg8[%c0_25, %c0_26, %c0_27] : memref<4x8x1xf32, #tpu.memory_space<vmem>>, vector<1x8x1xf32>
    %40 = vector.shape_cast %39 : vector<1x8x1xf32> to vector<8x1xf32>
    %41 = vector.shape_cast %17 : vector<8x1xf32> to vector<1x8x1xf32>
    tpu.vector_store %arg8[%c0_25, %c0_26, %c0_27], %41 {strides = array<i32>} : memref<4x8x1xf32, #tpu.memory_space<vmem>>, vector<1x8x1xf32>,
    %42 = vector.extract_strided_slice %4 {offsets = [0, 8], sizes = [8, 8], strides = [1, 1]} : vector<8x32xbf16> to vector<8x8xbf16>
    %43 = vector.extract_strided_slice %6 {offsets = [0, 8], sizes = [8, 8], strides = [1, 1]} : vector<8x32xbf16> to vector<8x8xbf16>
    %44 = vector.extract_strided_slice %8 {offsets = [0, 8], sizes = [8, 8], strides = [1, 1]} : vector<8x32xbf16> to vector<8x8xbf16>
    %cst_28 = arith.constant dense<0.000000e+00> : vector<8x8xf32>
    %45 = tpu.matmul %42, %43, %cst_28 {dimension_numbers = #tpu.dot_dimension_numbers<[1], [1], [0], [0], [0, 0, 1, 0], [], []>} : vector<8x8xbf16>, vector<8x8xbf16>, vector<8x8xf32> -> vector<8x8xf32>
    %c1 = arith.constant 1 : index
    %c0_29 = arith.constant 0 : index
    %c0_30 = arith.constant 0 : index
    %46 = vector.load %arg8[%c1, %c0_29, %c0_30] : memref<4x8x1xf32, #tpu.memory_space<vmem>>, vector<1x8x1xf32>
    %47 = vector.shape_cast %46 : vector<1x8x1xf32> to vector<8x1xf32>
    %cst_31 = arith.constant dense<0xFF800000> : vector<8xf32>
    %48 = vector.multi_reduction <maximumf>, %45, %cst_31 [1] : vector<8x8xf32> to vector<8xf32>
    %49 = vector.shape_cast %48 : vector<8xf32> to vector<8x1xf32>
    %50 = arith.maximumf %47, %49 : vector<8x1xf32>
    %51 = arith.subf %47, %50 : vector<8x1xf32>
    %52 = math.exp %51 : vector<8x1xf32>
    %53 = vector.broadcast %50 : vector<8x1xf32> to vector<8x8xf32>
    %54 = arith.subf %45, %53 : vector<8x8xf32>
    %55 = math.exp %54 : vector<8x8xf32>
    %c1_32 = arith.constant 1 : index
    %c0_33 = arith.constant 0 : index
    %c0_34 = arith.constant 0 : index
    %56 = vector.load %arg9[%c1_32, %c0_33, %c0_34] : memref<4x8x1xf32, #tpu.memory_space<vmem>>, vector<1x8x1xf32>
    %57 = vector.shape_cast %56 : vector<1x8x1xf32> to vector<8x1xf32>
    %58 = arith.mulf %52, %57 : vector<8x1xf32>
    %cst_35 = arith.constant dense<0.000000e+00> : vector<8xf32>
    %59 = vector.multi_reduction <add>, %55, %cst_35 [1] : vector<8x8xf32> to vector<8xf32>
    %60 = vector.shape_cast %59 : vector<8xf32> to vector<8x1xf32>
    %61 = arith.addf %58, %60 : vector<8x1xf32>
    %c1_36 = arith.constant 1 : index
    %c0_37 = arith.constant 0 : index
    %c0_38 = arith.constant 0 : index
    %62 = vector.load %arg9[%c1_36, %c0_37, %c0_38] : memref<4x8x1xf32, #tpu.memory_space<vmem>>, vector<1x8x1xf32>
    %63 = vector.shape_cast %62 : vector<1x8x1xf32> to vector<8x1xf32>
    %64 = vector.shape_cast %61 : vector<8x1xf32> to vector<1x8x1xf32>
    tpu.vector_store %arg9[%c1_36, %c0_37, %c0_38], %64 {strides = array<i32>} : memref<4x8x1xf32, #tpu.memory_space<vmem>>, vector<1x8x1xf32>,
    %65 = arith.truncf %55 : vector<8x8xf32> to vector<8x8xbf16>
    %cst_39 = arith.constant dense<0.000000e+00> : vector<8x8xf32>
    %66 = tpu.matmul %65, %44, %cst_39 {dimension_numbers = #tpu.dot_dimension_numbers<[1], [0], [0], [1], [0, 0, 1, 1], [], []>} : vector<8x8xbf16>, vector<8x8xbf16>, vector<8x8xf32> -> vector<8x8xf32>
    %c0_40 = arith.constant 0 : index
    %c8 = arith.constant 8 : index
    %67 = vector.load %arg10[%c0_40, %c8] : memref<8x32xf32, #tpu.memory_space<vmem>>, vector<8x8xf32>
    %68 = vector.broadcast %52 : vector<8x1xf32> to vector<8x8xf32>
    %69 = arith.mulf %68, %67 : vector<8x8xf32>
    %70 = arith.addf %69, %66 : vector<8x8xf32>
    %c0_41 = arith.constant 0 : index
    %c8_42 = arith.constant 8 : index
    %71 = vector.load %arg10[%c0_41, %c8_42] : memref<8x32xf32, #tpu.memory_space<vmem>>, vector<8x8xf32>
    tpu.vector_store %arg10[%c0_41, %c8_42], %70 {strides = array<i32>} : memref<8x32xf32, #tpu.memory_space<vmem>>, vector<8x8xf32>,
    %c1_43 = arith.constant 1 : index
    %c0_44 = arith.constant 0 : index
    %c0_45 = arith.constant 0 : index
    %72 = vector.load %arg8[%c1_43, %c0_44, %c0_45] : memref<4x8x1xf32, #tpu.memory_space<vmem>>, vector<1x8x1xf32>
    %73 = vector.shape_cast %72 : vector<1x8x1xf32> to vector<8x1xf32>
    %74 = vector.shape_cast %50 : vector<8x1xf32> to vector<1x8x1xf32>
    tpu.vector_store %arg8[%c1_43, %c0_44, %c0_45], %74 {strides = array<i32>} : memref<4x8x1xf32, #tpu.memory_space<vmem>>, vector<1x8x1xf32>,
    %75 = vector.extract_strided_slice %4 {offsets = [0, 16], sizes = [8, 8], strides = [1, 1]} : vector<8x32xbf16> to vector<8x8xbf16>
    %76 = vector.extract_strided_slice %6 {offsets = [0, 16], sizes = [8, 8], strides = [1, 1]} : vector<8x32xbf16> to vector<8x8xbf16>
    %77 = vector.extract_strided_slice %8 {offsets = [0, 16], sizes = [8, 8], strides = [1, 1]} : vector<8x32xbf16> to vector<8x8xbf16>
    %cst_46 = arith.constant dense<0.000000e+00> : vector<8x8xf32>
    %78 = tpu.matmul %75, %76, %cst_46 {dimension_numbers = #tpu.dot_dimension_numbers<[1], [1], [0], [0], [0, 0, 1, 0], [], []>} : vector<8x8xbf16>, vector<8x8xbf16>, vector<8x8xf32> -> vector<8x8xf32>
    %c2 = arith.constant 2 : index
    %c0_47 = arith.constant 0 : index
    %c0_48 = arith.constant 0 : index
    %79 = vector.load %arg8[%c2, %c0_47, %c0_48] : memref<4x8x1xf32, #tpu.memory_space<vmem>>, vector<1x8x1xf32>
    %80 = vector.shape_cast %79 : vector<1x8x1xf32> to vector<8x1xf32>
    %cst_49 = arith.constant dense<0xFF800000> : vector<8xf32>
    %81 = vector.multi_reduction <maximumf>, %78, %cst_49 [1] : vector<8x8xf32> to vector<8xf32>
    %82 = vector.shape_cast %81 : vector<8xf32> to vector<8x1xf32>
    %83 = arith.maximumf %80, %82 : vector<8x1xf32>
    %84 = arith.subf %80, %83 : vector<8x1xf32>
    %85 = math.exp %84 : vector<8x1xf32>
    %86 = vector.broadcast %83 : vector<8x1xf32> to vector<8x8xf32>
    %87 = arith.subf %78, %86 : vector<8x8xf32>
    %88 = math.exp %87 : vector<8x8xf32>
    %c2_50 = arith.constant 2 : index
    %c0_51 = arith.constant 0 : index
    %c0_52 = arith.constant 0 : index
    %89 = vector.load %arg9[%c2_50, %c0_51, %c0_52] : memref<4x8x1xf32, #tpu.memory_space<vmem>>, vector<1x8x1xf32>
    %90 = vector.shape_cast %89 : vector<1x8x1xf32> to vector<8x1xf32>
    %91 = arith.mulf %85, %90 : vector<8x1xf32>
    %cst_53 = arith.constant dense<0.000000e+00> : vector<8xf32>
    %92 = vector.multi_reduction <add>, %88, %cst_53 [1] : vector<8x8xf32> to vector<8xf32>
    %93 = vector.shape_cast %92 : vector<8xf32> to vector<8x1xf32>
    %94 = arith.addf %91, %93 : vector<8x1xf32>
    %c2_54 = arith.constant 2 : index
    %c0_55 = arith.constant 0 : index
    %c0_56 = arith.constant 0 : index
    %95 = vector.load %arg9[%c2_54, %c0_55, %c0_56] : memref<4x8x1xf32, #tpu.memory_space<vmem>>, vector<1x8x1xf32>
    %96 = vector.shape_cast %95 : vector<1x8x1xf32> to vector<8x1xf32>
    %97 = vector.shape_cast %94 : vector<8x1xf32> to vector<1x8x1xf32>
    tpu.vector_store %arg9[%c2_54, %c0_55, %c0_56], %97 {strides = array<i32>} : memref<4x8x1xf32, #tpu.memory_space<vmem>>, vector<1x8x1xf32>,
    %98 = arith.truncf %88 : vector<8x8xf32> to vector<8x8xbf16>
    %cst_57 = arith.constant dense<0.000000e+00> : vector<8x8xf32>
    %99 = tpu.matmul %98, %77, %cst_57 {dimension_numbers = #tpu.dot_dimension_numbers<[1], [0], [0], [1], [0, 0, 1, 1], [], []>} : vector<8x8xbf16>, vector<8x8xbf16>, vector<8x8xf32> -> vector<8x8xf32>
    %c0_58 = arith.constant 0 : index
    %c16 = arith.constant 16 : index
    %100 = vector.load %arg10[%c0_58, %c16] : memref<8x32xf32, #tpu.memory_space<vmem>>, vector<8x8xf32>
    %101 = vector.broadcast %85 : vector<8x1xf32> to vector<8x8xf32>
    %102 = arith.mulf %101, %100 : vector<8x8xf32>
    %103 = arith.addf %102, %99 : vector<8x8xf32>
    %c0_59 = arith.constant 0 : index
    %c16_60 = arith.constant 16 : index
    %104 = vector.load %arg10[%c0_59, %c16_60] : memref<8x32xf32, #tpu.memory_space<vmem>>, vector<8x8xf32>
    tpu.vector_store %arg10[%c0_59, %c16_60], %103 {strides = array<i32>} : memref<8x32xf32, #tpu.memory_space<vmem>>, vector<8x8xf32>,
    %c2_61 = arith.constant 2 : index
    %c0_62 = arith.constant 0 : index
    %c0_63 = arith.constant 0 : index
    %105 = vector.load %arg8[%c2_61, %c0_62, %c0_63] : memref<4x8x1xf32, #tpu.memory_space<vmem>>, vector<1x8x1xf32>
    %106 = vector.shape_cast %105 : vector<1x8x1xf32> to vector<8x1xf32>
    %107 = vector.shape_cast %83 : vector<8x1xf32> to vector<1x8x1xf32>
    tpu.vector_store %arg8[%c2_61, %c0_62, %c0_63], %107 {strides = array<i32>} : memref<4x8x1xf32, #tpu.memory_space<vmem>>, vector<1x8x1xf32>,
    %108 = vector.extract_strided_slice %4 {offsets = [0, 24], sizes = [8, 8], strides = [1, 1]} : vector<8x32xbf16> to vector<8x8xbf16>
    %109 = vector.extract_strided_slice %6 {offsets = [0, 24], sizes = [8, 8], strides = [1, 1]} : vector<8x32xbf16> to vector<8x8xbf16>
    %110 = vector.extract_strided_slice %8 {offsets = [0, 24], sizes = [8, 8], strides = [1, 1]} : vector<8x32xbf16> to vector<8x8xbf16>
    %cst_64 = arith.constant dense<0.000000e+00> : vector<8x8xf32>
    %111 = tpu.matmul %108, %109, %cst_64 {dimension_numbers = #tpu.dot_dimension_numbers<[1], [1], [0], [0], [0, 0, 1, 0], [], []>} : vector<8x8xbf16>, vector<8x8xbf16>, vector<8x8xf32> -> vector<8x8xf32>
    %c3 = arith.constant 3 : index
    %c0_65 = arith.constant 0 : index
    %c0_66 = arith.constant 0 : index
    %112 = vector.load %arg8[%c3, %c0_65, %c0_66] : memref<4x8x1xf32, #tpu.memory_space<vmem>>, vector<1x8x1xf32>
    %113 = vector.shape_cast %112 : vector<1x8x1xf32> to vector<8x1xf32>
    %cst_67 = arith.constant dense<0xFF800000> : vector<8xf32>
    %114 = vector.multi_reduction <maximumf>, %111, %cst_67 [1] : vector<8x8xf32> to vector<8xf32>
    %115 = vector.shape_cast %114 : vector<8xf32> to vector<8x1xf32>
    %116 = arith.maximumf %113, %115 : vector<8x1xf32>
    %117 = arith.subf %113, %116 : vector<8x1xf32>
    %118 = math.exp %117 : vector<8x1xf32>
    %119 = vector.broadcast %116 : vector<8x1xf32> to vector<8x8xf32>
    %120 = arith.subf %111, %119 : vector<8x8xf32>
    %121 = math.exp %120 : vector<8x8xf32>
    %c3_68 = arith.constant 3 : index
    %c0_69 = arith.constant 0 : index
    %c0_70 = arith.constant 0 : index
    %122 = vector.load %arg9[%c3_68, %c0_69, %c0_70] : memref<4x8x1xf32, #tpu.memory_space<vmem>>, vector<1x8x1xf32>
    %123 = vector.shape_cast %122 : vector<1x8x1xf32> to vector<8x1xf32>
    %124 = arith.mulf %118, %123 : vector<8x1xf32>
    %cst_71 = arith.constant dense<0.000000e+00> : vector<8xf32>
    %125 = vector.multi_reduction <add>, %121, %cst_71 [1] : vector<8x8xf32> to vector<8xf32>
    %126 = vector.shape_cast %125 : vector<8xf32> to vector<8x1xf32>
    %127 = arith.addf %124, %126 : vector<8x1xf32>
    %c3_72 = arith.constant 3 : index
    %c0_73 = arith.constant 0 : index
    %c0_74 = arith.constant 0 : index
    %128 = vector.load %arg9[%c3_72, %c0_73, %c0_74] : memref<4x8x1xf32, #tpu.memory_space<vmem>>, vector<1x8x1xf32>
    %129 = vector.shape_cast %128 : vector<1x8x1xf32> to vector<8x1xf32>
    %130 = vector.shape_cast %127 : vector<8x1xf32> to vector<1x8x1xf32>
    tpu.vector_store %arg9[%c3_72, %c0_73, %c0_74], %130 {strides = array<i32>} : memref<4x8x1xf32, #tpu.memory_space<vmem>>, vector<1x8x1xf32>,
    %131 = arith.truncf %121 : vector<8x8xf32> to vector<8x8xbf16>
    %cst_75 = arith.constant dense<0.000000e+00> : vector<8x8xf32>
    %132 = tpu.matmul %131, %110, %cst_75 {dimension_numbers = #tpu.dot_dimension_numbers<[1], [0], [0], [1], [0, 0, 1, 1], [], []>} : vector<8x8xbf16>, vector<8x8xbf16>, vector<8x8xf32> -> vector<8x8xf32>
    %c0_76 = arith.constant 0 : index
    %c24 = arith.constant 24 : index
    %133 = vector.load %arg10[%c0_76, %c24] : memref<8x32xf32, #tpu.memory_space<vmem>>, vector<8x8xf32>
    %134 = vector.broadcast %118 : vector<8x1xf32> to vector<8x8xf32>
    %135 = arith.mulf %134, %133 : vector<8x8xf32>
    %136 = arith.addf %135, %132 : vector<8x8xf32>
    %c0_77 = arith.constant 0 : index
    %c24_78 = arith.constant 24 : index
    %137 = vector.load %arg10[%c0_77, %c24_78] : memref<8x32xf32, #tpu.memory_space<vmem>>, vector<8x8xf32>
    tpu.vector_store %arg10[%c0_77, %c24_78], %136 {strides = array<i32>} : memref<8x32xf32, #tpu.memory_space<vmem>>, vector<8x8xf32>,
    %c3_79 = arith.constant 3 : index
    %c0_80 = arith.constant 0 : index
    %c0_81 = arith.constant 0 : index
    %138 = vector.load %arg8[%c3_79, %c0_80, %c0_81] : memref<4x8x1xf32, #tpu.memory_space<vmem>>, vector<1x8x1xf32>
    %139 = vector.shape_cast %138 : vector<1x8x1xf32> to vector<8x1xf32>
    %140 = vector.shape_cast %116 : vector<8x1xf32> to vector<1x8x1xf32>
    tpu.vector_store %arg8[%c3_79, %c0_80, %c0_81], %140 {strides = array<i32>} : memref<4x8x1xf32, #tpu.memory_space<vmem>>, vector<1x8x1xf32>,
    %c0_i32_82 = arith.constant 0 : i32
    %141 = arith.cmpi eq, %arg3, %c0_i32_82 : i32
    %142 = arith.extui %141 : i1 to i32
    %c0_i32_83 = arith.constant 0 : i32
    %143 = arith.cmpi ne, %142, %c0_i32_83 : i32
    scf.if %143 {
      %c0_84 = arith.constant 0 : index
      %c0_85 = arith.constant 0 : index
      %c0_86 = arith.constant 0 : index
      %144 = vector.load %arg9[%c0_84, %c0_85, %c0_86] : memref<4x8x1xf32, #tpu.memory_space<vmem>>, vector<4x8x1xf32>
      %145 = tpu.reciprocal %144 {approx = true} : vector<4x8x1xf32> -> vector<4x8x1xf32>
      %146 = vector.extract_strided_slice %145 {offsets = [0, 0, 0], sizes = [1, 8, 1], strides = [1, 1, 1]} : vector<4x8x1xf32> to vector<1x8x1xf32>
      %147 = vector.shape_cast %146 : vector<1x8x1xf32> to vector<8x1xf32>
      %148 = vector.shape_cast %147 : vector<8x1xf32> to vector<8x1xf32>
      %149 = vector.broadcast %148 : vector<8x1xf32> to vector<8x8xf32>
      %150 = vector.extract_strided_slice %145 {offsets = [1, 0, 0], sizes = [1, 8, 1], strides = [1, 1, 1]} : vector<4x8x1xf32> to vector<1x8x1xf32>
      %151 = vector.shape_cast %150 : vector<1x8x1xf32> to vector<8x1xf32>
      %152 = vector.shape_cast %151 : vector<8x1xf32> to vector<8x1xf32>
      %153 = vector.broadcast %152 : vector<8x1xf32> to vector<8x8xf32>
      %154 = vector.extract_strided_slice %145 {offsets = [2, 0, 0], sizes = [1, 8, 1], strides = [1, 1, 1]} : vector<4x8x1xf32> to vector<1x8x1xf32>
      %155 = vector.shape_cast %154 : vector<1x8x1xf32> to vector<8x1xf32>
      %156 = vector.shape_cast %155 : vector<8x1xf32> to vector<8x1xf32>
      %157 = vector.broadcast %156 : vector<8x1xf32> to vector<8x8xf32>
      %158 = vector.extract_strided_slice %145 {offsets = [3, 0, 0], sizes = [1, 8, 1], strides = [1, 1, 1]} : vector<4x8x1xf32> to vector<1x8x1xf32>
      %159 = vector.shape_cast %158 : vector<1x8x1xf32> to vector<8x1xf32>
      %160 = vector.shape_cast %159 : vector<8x1xf32> to vector<8x1xf32>
      %161 = vector.broadcast %160 : vector<8x1xf32> to vector<8x8xf32>
      %162 = tpu.concatenate %149, %153, %157, %161 in 1 : vector<8x8xf32>, vector<8x8xf32>, vector<8x8xf32>, vector<8x8xf32> -> vector<8x32xf32>
      %c0_87 = arith.constant 0 : index
      %c0_88 = arith.constant 0 : index
      %163 = vector.load %arg10[%c0_87, %c0_88] : memref<8x32xf32, #tpu.memory_space<vmem>>, vector<8x32xf32>
      %164 = arith.mulf %163, %162 : vector<8x32xf32>
      %c0_89 = arith.constant 0 : index
      %c0_90 = arith.constant 0 : index
      %c0_91 = arith.constant 0 : index
      %165 = vector.load %arg7[%c0_89, %c0_90, %c0_91] : memref<1x8x32xf32, #tpu.memory_space<vmem>>, vector<1x8x32xf32>
      %166 = vector.shape_cast %165 : vector<1x8x32xf32> to vector<8x32xf32>
      %167 = vector.shape_cast %164 : vector<8x32xf32> to vector<1x8x32xf32>
      tpu.vector_store %arg7[%c0_89, %c0_90, %c0_91], %167 {strides = array<i32>} : memref<1x8x32xf32, #tpu.memory_space<vmem>>, vector<1x8x32xf32>,
    } else {
    }
    return
  }
  func.func @transform_0(%arg0: i32, %arg1: i32, %arg2: i32, %arg3: i32) -> (i32, i32, i32) {
    %c0_i32 = arith.constant 0 : i32
    return %arg0, %arg2, %arg1 : i32, i32, i32
  }
  func.func @transform_1(%arg0: i32, %arg1: i32, %arg2: i32, %arg3: i32) -> (i32, i32, i32) {
    %c0_i32 = arith.constant 0 : i32
    return %arg0, %arg3, %arg1 : i32, i32, i32
  }
  func.func @transform_2(%arg0: i32, %arg1: i32, %arg2: i32, %arg3: i32) -> (i32, i32, i32) {
    %c0_i32 = arith.constant 0 : i32
    return %arg0, %arg3, %arg1 : i32, i32, i32
  }
  func.func @transform_3(%arg0: i32, %arg1: i32, %arg2: i32, %arg3: i32) -> (i32, i32, i32) {
    %c0_i32 = arith.constant 0 : i32
    return %arg0, %arg2, %arg1 : i32, i32, i32
  }
}

</mosaic_0001>

<bundles_post_ra>
// kernel: tpu_custom_call.1
= control target key start
LH: loop header
LB: loop body
LE: loop exit
PB: predicated region body
PF: predicated region fallthrough
CT: control target
= control target key end

     0   :  { %s1872_s0 = inlined_call_operand.hbm [shape: bf16[2,8,32], index: 0, kind: input, shape index: {}]   ;;  %s1873_s1 = inlined_call_operand.hbm [shape: bf16[2,8,32], index: 1, kind: input, shape index: {}]   ;;  %s1874_s2 = inlined_call_operand.hbm [shape: bf16[2,8,32], index: 2, kind: input, shape index: {}]   ;;  %s1875_s3 = inlined_call_operand.hbm [shape: f32[2,8,32], index: 3, kind: output, shape index: {}]  }
   0x1   :  { %1881 = sst [smem:[#allocation18_spill]] %s1873_s1 }
   0x2   :  { %8 = vsyncpa [#allocation6], 0 }
   0x3   :  { %10 = vsyncpa [#allocation6 + $0x1], 0 }
   0x4   :  { %11 = vsyncpa [#allocation9], 0 }
   0x5   :  { %13 = vsyncpa [#allocation9 + $0x1], 0 }
   0x6   :  { %14 = vsyncpa [#allocation7], 0 }
   0x7   :  { %16 = vsyncpa [#allocation7 + $0x1], 0  ;;  %s1486_s12 = smov 0   ;;  %s1488_s13 = smov 0  }
   0x8   :  { %s1490_s14 = smov 0   ;;  %s1492_s15 = smov 0  }
   0x9   :  { %s1494_s16 = smov 0   ;;  %s1496_s17 = smov 0  }
   0xa LB: > { %1882 = sst [smem:[#allocation15_spill]] %s1446_s16  ;;  %s1517_s18 = sadd.s32 4294967295, %s1450_s17   ;;  %s1450_s17 = sphi %s1496_s17, %s22_s17   ;;  %s1446_s16 = sphi %s1494_s16, %s1903_s16   ;;  %s1442_s15 = sphi %s1492_s15, %s1902_s15   ;;  %s1438_s14 = sphi %s1490_s14, %s1906_s14   ;;  %s1434_s13 = sphi %s1488_s13, %s1905_s13   ;;  %s1430_s12 = sphi %s1486_s12, %s1904_s12  }
   0xb   : > { %s1071_s19 = sadd.s32 4294967294, %s1450_s17   ;;  %s48_s20 = sadd.s32 1, %s1446_s16 }
   0xc   : > { %s59_s21 = sadd.s32 1, %s1438_s14  ;;  %p50_p0 = scmp.ge.s32.totalorder %s48_s20, 2 }
   0xd   : > { %p66_p1 = scmp.ne.s32.totalorder %s1438_s14, %s1434_s13  ;;  %p67_p2 = scmp.eq.s32.totalorder %s1450_s17, 0 }
   0xe   : > { %p72_p3 = scmp.ne.s32.totalorder %s1434_s13, %s1430_s12  ;;  %s1908_s20 = smov (%p50_p0, %s48_s20), 0 }
   0xf   : > { %1883 = sst [smem:[#allocation16_spill]] %s1908_s20  ;;  %p1529_p4 = por %p67_p2, %p66_p1 }
  0x10   : > { %p73_p5 = scmp.eq.s32.totalorder %s1517_s18, 0  ;;  %s52_s23 = ssub.s32 %s1446_s16, %s1908_s20 }
  0x11   : > { %p160_p6 = scmp.eq.s32.totalorder %s1517_s18, 1  ;;  %p57_p7 = scmp.eq.s32.totalorder %s52_s23, 0 }
  0x12   : > { %p1537_p8 = por %p73_p5, %p72_p3  ;;  %p166_p10 = scmp.eq.s32.totalorder %s1071_s19, 1 }
  0x13   : > { %p1541_p9 = por %p160_p6, %p66_p1  ;;  %p1186_p13 = scmp.lt.s32.totalorder %s1450_s17, 2 }
  0x14   : > { %s1885_s24 = scalar_select %p1537_p8, 1, 0 }
  0x15   : > { %s1886_s25 = scalar_select %p1541_p9, 1, 0 }
  0x16   : > { %s1546_s26 = scalar_select %p57_p7, %s1438_s14, %s59_s21  }
  0x17   : > { %p1548_p11 = por %p166_p10, %p72_p3  ;;  %s186_s28 = sand.u32 1, %s1438_s14  }
  0x18   : > { %1887 = sst [smem:[#allocation17_spill]] %s1546_s26  ;;  %s1557_s29 = sshll.u32 %s186_s28, 2 }
  0x19   : > { %s1888_s27 = scalar_select %p1548_p11, 1, 0 }
  0x1a   : > { %s1560_s30 = sshll.u32 %s1446_s16, 6  ;;  %p1564_p0 = pnand %p1186_p13, %p1529_p4 }
  0x1b   : > { %s206_s5 = sand.u32 1, %s1450_s17   ;;  %s1890_s1 = sld [smem:[#allocation18_spill]] }
  0x1c   : > { %s1889_s4 = scalar_select %p1564_p0, 1, 0 }
  0x1d   : > { %s210_s9 = scalar_lea.vmem [#allocation8], %s1557_s29  ;;  %s1580_s11 = scalar_lea.sflag [#allocation9], %s206_s5 }
  0x1e   : > { %s219_s10 = sshll.u32 %s210_s9, 4  ;;  %p1586_p4 = pneg %p1564_p0  ;;  %s1577_s10 = int_to_ptr.vmem [resolvable:$true] %s219_s10 }
  0x21   : > { %s1573_s8 = scalar_lea.hbm %s1890_s1, %s1560_s30  ;;  %s1279_s6 = scalar_lea.hbm %s1890_s1, 128 }
  0x22   : > { %s1274_s19 = scalar_lea.hbm %s1573_s8, 64  ;;  %p1280_p7 = scmp.lt.u32.totalorder %s1573_s8, %s1890_s1 }
  0x23   : > { %p1275_p3 = scmp.ne.s32.totalorder %s1573_s8, %s1274_s19  ;;  %p1281_p10 = scmp.lt.u32.totalorder %s1279_s6, %s1274_s19 }
  0x24   : > { %p1283_p12 = scmp.lt.u32.totalorder %s1274_s19, %s1573_s8 }
  0x25   : > { %p1277_p5 = pnand %p1586_p4, %p1275_p3  ;;  %p1282_p13 = por %p1281_p10, %p1280_p7 }
  0x27   : > { %p1278_p6 = pneg %p1277_p5  ;;  %p1284_p1 = por %p1283_p12, %p1282_p13 }
  0x29   : > { %p1285_p2 = pnand %p1284_p1, %p1278_p6 }
  0x2b   : > { %1288 = shalt.err (!%p1285_p2)
}
  0x2c   : > { %s1289_s5 = scalar_lea.vmem %s1577_s10, 64  ;;  %s1452_s22 = smov [#allocation8]  }
  0x2d   : > { %p1290_p3 = scmp.ne.s32.totalorder %s1577_s10, %s1289_s5  ;;  %s1294_s23 = sshll.u32 %s1452_s22, 4  ;;  %s1295_s23 = int_to_ptr.vmem [resolvable:$false] %s1294_s23 }
  0x2e   : > { %s1296_s7 = scalar_lea.vmem %s1295_s23, 128  ;;  %p1297_p9 = scmp.lt.s32.totalorder %s1577_s10, %s1295_s23 }
  0x2f   : > { %p1292_p5 = pnand %p1290_p3, %p1586_p4  ;;  %p1298_p8 = scmp.lt.s32.totalorder %s1296_s7, %s1289_s5 }
  0x31   : > { %p1293_p11 = pneg %p1292_p5  ;;  %p1299_p7 = por %p1298_p8, %p1297_p9 }
  0x33   : > { %p1300_p10 = pnand %p1299_p7, %p1293_p11 }
  0x35   : > { %1303 = shalt.err (!%p1300_p10)
}
  0x36   : > { %1178 = dma.hbm_to_vmem [thread:$0]  (!%p1564_p0), %s1573_s8, 64, %s1577_s10, %s1580_s11  }
  0x37   : > { %p1892_p12 = scmp.lt.s32.totalorder %s1450_s17, 3  ;;  %p1893_p1 = scmp.ge.s32.totalorder %s1450_s17, 1 }
  0x38   : > { %s1622_s5 = scalar_lea.hbm %s1872_s0, %s1560_s30  ;;  %s190_s22 = scalar_lea.vmem [#allocation5], %s1557_s29 }
  0x39   : > { %p1614_p2 = pnand %p1893_p1, %p1892_p12  ;;  %s199_s23 = sshll.u32 %s190_s22, 4  ;;  %s1625_s23 = int_to_ptr.vmem [resolvable:$true] %s199_s23 }
  0x3a   : > { %s1631_s7 = scalar_lea.hbm %s1874_s2, %s1560_s30  ;;  %s187_s1 = scalar_lea.sflag [#allocation6], %s186_s28 }
  0x3b   : > { %s1894_s19 = scalar_select %p1614_p2, 1, 0 }
  0x3c   : > { %s1304_s20 = scalar_lea.hbm %s1622_s5, 64  ;;  %s1309_s16 = scalar_lea.hbm %s1872_s0, 128 }
  0x3d   : > { %p1305_p8 = scmp.ne.s32.totalorder %s1622_s5, %s1304_s20  ;;  %p1310_p6 = scmp.lt.u32.totalorder %s1622_s5, %s1872_s0 }
  0x3e   : > { %p1311_p13 = scmp.lt.u32.totalorder %s1309_s16, %s1304_s20  ;;  %p1313_p5 = scmp.lt.u32.totalorder %s1304_s20, %s1622_s5 }
  0x3f   : > { %p1307_p9 = pnand %p1305_p8, %p1586_p4 }
  0x40   : > { %p1312_p3 = por %p1311_p13, %p1310_p6 }
  0x41   : > { %p1308_p11 = pneg %p1307_p9 }
  0x42   : > { %p1314_p7 = por %p1313_p5, %p1312_p3 }
  0x44   : > { %p1315_p10 = pnand %p1314_p7, %p1308_p11 }
  0x46   : > { %1318 = shalt.err (!%p1315_p10)
}
  0x47   : > { %s1319_s28 = scalar_lea.vmem %s1625_s23, 64  ;;  %s1453_s30 = smov [#allocation5]  }
  0x48   : > { %p1320_p12 = scmp.ne.s32.totalorder %s1625_s23, %s1319_s28  ;;  %s1324_s8 = sshll.u32 %s1453_s30, 4  ;;  %s1325_s8 = int_to_ptr.vmem [resolvable:$false] %s1324_s8 }
  0x49   : > { %s1326_s26 = scalar_lea.vmem %s1325_s8, 128  ;;  %p1327_p9 = scmp.lt.s32.totalorder %s1625_s23, %s1325_s8 }
  0x4a   : > { %p1322_p1 = pnand %p1320_p12, %p1586_p4  ;;  %p1328_p2 = scmp.lt.s32.totalorder %s1326_s26, %s1319_s28 }
  0x4c   : > { %p1323_p8 = pneg %p1322_p1  ;;  %p1329_p6 = por %p1328_p2, %p1327_p9 }
  0x4e   : > { %p1330_p13 = pnand %p1329_p6, %p1323_p8 }
  0x50   : > { %1333 = shalt.err (!%p1330_p13)
}
  0x51   : > { %1175 = dma.hbm_to_vmem [thread:$0]  (!%p1564_p0), %s1622_s5, 64, %s1625_s23, %s187_s1  }
  0x52   : > { %s230_s16 = scalar_lea.vmem [#allocation10], %s1557_s29  ;;  %s1334_s10 = scalar_lea.hbm %s1631_s7, 64 }
  0x53   : > { %s239_s20 = sshll.u32 %s230_s16, 4  ;;  %p1335_p11 = scmp.ne.s32.totalorder %s1631_s7, %s1334_s10  ;;  %s240_s20 = int_to_ptr.vmem [resolvable:$true] %s239_s20 }
  0x54   : > { %s1339_s22 = scalar_lea.hbm %s1874_s2, 128  ;;  %p1340_p5 = scmp.lt.u32.totalorder %s1631_s7, %s1874_s2 }
  0x55   : > { %p1337_p2 = pnand %p1335_p11, %p1586_p4  ;;  %p1341_p7 = scmp.lt.u32.totalorder %s1339_s22, %s1334_s10 }
  0x56   : > { %p1343_p12 = scmp.lt.u32.totalorder %s1334_s10, %s1631_s7 }
  0x57   : > { %p1338_p3 = pneg %p1337_p2  ;;  %p1342_p10 = por %p1341_p7, %p1340_p5 }
  0x59   : > { %p1344_p1 = por %p1343_p12, %p1342_p10 }
  0x5b   : > { %p1345_p8 = pnand %p1344_p1, %p1338_p3 }
  0x5d   : > { %1348 = shalt.err (!%p1345_p8)
}
  0x5e   : > { %s1349_s1 = scalar_lea.vmem %s240_s20, 64  ;;  %s1454_s29 = smov [#allocation10]  }
  0x5f   : > { %p1350_p9 = scmp.ne.s32.totalorder %s240_s20, %s1349_s1  ;;  %s1354_s5 = sshll.u32 %s1454_s29, 4  ;;  %s1355_s5 = int_to_ptr.vmem [resolvable:$false] %s1354_s5 }
  0x60   : > { %s1356_s23 = scalar_lea.vmem %s1355_s5, 128  ;;  %p1357_p11 = scmp.lt.s32.totalorder %s240_s20, %s1355_s5 }
  0x61   : > { %p1352_p6 = pnand %p1350_p9, %p1586_p4  ;;  %p1358_p2 = scmp.lt.s32.totalorder %s1356_s23, %s1349_s1 }
  0x63   : > { %p1353_p13 = pneg %p1352_p6  ;;  %p1359_p0 = por %p1358_p2, %p1357_p11 }
  0x65   : > { %p1360_p5 = pnand %p1359_p0, %p1353_p13 }
  0x67   : > { %1363 = shalt.err (!%p1360_p5)
}
  0x68   : > { %p1895_p7 = scmp.ne.s32.totalorder %s1889_s4, 0  ;;  %p1896_p3 = scmp.ne.s32.totalorder %s1894_s19, 0 }
  0x69   : > { %s1678_s21 = sand.u32 (!%p1896_p3), 1, %s1434_s13   ;;  %p1897_p0 = scmp.ne.s32.totalorder (!%p1896_p3), %s1885_s24, 0 }
  0x6a   : > { %1181 = dma.hbm_to_vmem [thread:$0]  (!%p1895_p7), %s1631_s7, 64, %s240_s20, %s1580_s11  }
  0x6b   : > { %248 = sbr.rel (%p1896_p3) target bundleno = 1522 (0x5f2), region = 32  ;;  %s1681_s8 = sshll.u32 (!%p1896_p3), %s1678_s21, 2 }
  0x6c   : > { %s251_s26 = scalar_lea.sflag (!%p1896_p3), [#allocation6], %s1678_s21  ;;  %s254_s16 = scalar_lea.vmem (!%p1896_p3), [#allocation5], %s1681_s8 }
  0x72   : > { %1417 = dma.done.wait (%p1897_p0), %s251_s26, 64  }
  0x73   : > { %1419 = vsyncadd (%p1897_p0), %s251_s26, 4294967232  ;;  %s259_s4 = sand.u32 1, %s1517_s18   ;;  %s263_s19 = scalar_lea.vmem [#allocation8], %s1681_s8 }
  0x74   : > { %s260_s11 = scalar_lea.sflag [#allocation9], %s259_s4 }
  0x75   : > { %1421 = dma.done.wait (%p1897_p0), %s260_s11, 128  }
  0x76   : > { %1423 = vsyncadd (%p1897_p0), %s260_s11, 4294967168  ;;  %v1455_v0 = vmov 0.0   ;;  %vm1456_vm0 = vmmov 0   ;;  %vm324_vm1 = vcmask 64512   ;;  %v322_v1 = vld [vmem:[%s263_s19] sm:$0xf] }
  0x77   : > { %1116 = vmatprep.subr.bf16.mxu0 %v1455_v0  ;;  %1118 = vmatprep.mubr.msk.bf16.mxu0 %vm1456_vm0, %v1455_v0  ;;  %v329_v2 = vsel %vm324_vm1, %v322_v1, 0  ;;  %v321_v3 = vld [vmem:[%s254_s16] sm:$0xf]  ;;  %vm310_vm2 = vcmask 7168   ;;  %v1457_v4 = vmov -inf   ;;  %v1458_v10 = vmov 0  }
  0x78   : > { %1122 = vmatprep.subr.bf16.mxu1 %v1455_v0  ;;  %1124 = vmatprep.mubr.msk.bf16.mxu1 %vm1456_vm0, %v1455_v0  ;;  %311 = vst.msk [vmem:[#allocation2] sm:$0xff] %vm310_vm2, %v1457_v4  ;;  %312 = vst.msk [vmem:[#allocation2 + $0x8] sm:$0xff] %vm310_vm2, %v1457_v4  ;;  %v1088_v11 = vcombine.low %v322_v1, %v322_v1  ;;  %s1459_s18 = smov 120   ;;  %v1087_v12 = vcombine.low %v321_v3, %v321_v3  ;;  %s1460_s24 = smov 112   ;;  %vm399_vm3 = vcmask 1043456   ;;  %vm319_vm4 = vcmask 261120  }
  0x79   : > { %1117 = vmatpush3.bf16.xpose.msra.mxu0 %v329_v2  ;;  %313 = vst.msk [vmem:[#allocation2 + $0x10] sm:$0xff] %vm310_vm2, %v1457_v4  ;;  %314 = vst.msk [vmem:[#allocation2 + $0x18] sm:$0xff] %vm310_vm2, %v1457_v4  ;;  %1246 = vset.pattern.permute.xlu0 %v1458_v10  ;;  %s1461_s7 = smov 104   ;;  %s272_s20 = scalar_lea.vmem [#allocation10], %s1681_s8  ;;  %vm598_vm5 = vcmask 130112   ;;  %vm737_vm6 = vcmask 195712  }
  0x7a   : > { %1134 = vmatprep.subr.bf16.mxu0 %v1455_v0  ;;  %315 = vst.msk [vmem:[#allocation3] sm:$0xff] %vm310_vm2, %v1455_v0  ;;  %316 = vst.msk [vmem:[#allocation3 + $0x8] sm:$0xff] %vm310_vm2, %v1455_v0  ;;  %1247 = vset.pattern.permute.xlu1 %v1458_v10  ;;  %v323_v17 = vld [vmem:[%s272_s20] sm:$0xf]  ;;  %s1462_s10 = smov 8   ;;  %s1463_s6 = smov 16  }
  0x7b   : > { %317 = vst.msk [vmem:[#allocation3 + $0x10] sm:$0xff] %vm310_vm2, %v1455_v0  ;;  %318 = vst.msk [vmem:[#allocation3 + $0x18] sm:$0xff] %vm310_vm2, %v1455_v0  ;;  %461 = vrot.lane.b32.xlu1 %v1088_v11, %s1459_s18  ;;  %v401_v18 = vsel %vm399_vm3, %v323_v17, 0  ;;  %v1090_v56 = vcombine.low %v323_v17, %v323_v17  ;;  %s1464_s9 = smov 24   ;;  %vm876_vm7 = vcmask 261312   ;;  %s1084_s22 = sshll.u32 %s1678_s21, 3 }
  0x7c   : > { %1123 = vmatpush3.bf16.msra.mxu1 %v401_v18  ;;  %320 = vst.msk [vmem:[#allocation4] sm:$0xff] %vm319_vm4, %v1455_v0  ;;  %vm911_vm8 = vcmask 130048   ;;  %vm913_vm9 = vcmask 195584   ;;  %s1097_s28 = sshll.u32 %s1442_s15, 7  ;;  %s304_s30 = scalar_lea.vmem [#allocation11], %s1084_s22 }
  0x7d   : > { %1128 = vmatprep.subr.bf16.mxu1 %v1455_v0  ;;  %s935_s1 = sshll.u32 %s304_s30, 4  ;;  %s1822_s23 = scalar_lea.hbm %s1875_s3, %s1097_s28  ;;  %s1824_s1 = int_to_ptr.vmem [resolvable:$true] %s935_s1 }
  0x7e   : > { %s920_s8 = scalar_lea.sflag [#allocation7], %s1678_s21  ;;  %s1364_s15 = scalar_lea.vmem %s1824_s1, 128 }
  0x7f   : > { %456 = vrot.lane.b32.xlu1 %v1087_v12, %s1459_s18  ;;  %v371_v13 = vld [vmem:[#allocation2] sm:$0xff]  ;;  %v1753_v52 = vld [vmem:[#allocation2 + $0x8] sm:$0xff]  ;;  %p1365_p4 = scmp.ne.s32.totalorder %s1824_s1, %s1364_s15  ;;  %p1898_p10 = scmp.ne.s32.totalorder %s1886_s25, 0 }
  0x80   : > { %1119 = vmatmul.mubr.msk.bf16.vlgmr.msra.gmra.mrb[0].mxu0 %vm324_vm1, %v321_v3  ;;  %v1763_v58 = vld [vmem:[#allocation2 + $0x10] sm:$0xff]  ;;  %v1773_v63 = vld [vmem:[#allocation2 + $0x18] sm:$0xff]  ;;  %s1465_s26 = smov [#allocation11]  }
  0x81   : > { %1136 = vmatprep.mubr.msk.bf16.mxu0 %vm1456_vm0, %v1455_v0  ;;  %p1366_p12 = pnand %p1365_p4, %p1898_p10  ;;  %s1368_s16 = sshll.u32 %s1465_s26, 4  ;;  %s1369_s16 = int_to_ptr.vmem [resolvable:$false] %s1368_s16 }
  0x82   : > { %s1370_s4 = scalar_lea.vmem %s1369_s16, 256  ;;  %p1371_p8 = scmp.lt.s32.totalorder %s1824_s1, %s1369_s16 }
  0x83   : > { %603 = vrot.lane.b32.xlu1 %v1088_v11, %s1460_s24  ;;  %p1367_p1 = pneg %p1366_p12  ;;  %p1372_p9 = scmp.lt.s32.totalorder %s1370_s4, %s1364_s15 }
  0x85   : > { %p1373_p6 = por %p1372_p9, %p1371_p8 }
  0x87   : > { %601 = vrot.lane.b32.xlu1 %v1087_v12, %s1460_s24  ;;  %p1374_p13 = pnand %p1373_p6, %p1367_p1 }
  0x8b   : > { %742 = vrot.lane.b32.xlu1 %v1088_v11, %s1461_s7 }
  0x8f   : > { %740 = vrot.lane.b32.xlu1 %v1087_v12, %s1461_s7  ;;  %v443_v12 = vld [vmem:[#allocation4] sm:$0xff] }
  0xed   : > { %v462_v22 = vpop.permute.xlu1 %461 }
  0xee   : > { %v467_v25 = vsel %vm324_vm1, %v462_v22, 0 }
  0xf1   : > { %v457_v23 = vpop.permute.xlu1 %456 }
  0xf5   : > { %v604_v27 = vpop.permute.xlu1 %603 }
  0xf6   : > { %v609_v29 = vsel %vm324_vm1, %v604_v27, 0 }
  0xf9   : > { %v602_v28 = vpop.permute.xlu1 %601 }
  0xfd   : > { %v743_v30 = vpop.permute.xlu1 %742 }
  0xfe   : > { %v748_v31 = vsel %vm324_vm1, %v743_v30, 0 }
 0x101   : > { %v741_v32 = vpop.permute.xlu1 %740 }
 0x153   : > { %v365_v5 = vpop.f32.mrb[0].mxu0 }
 0x154   : > { %v1120_v6 = vpop.f32.mrb[1].mxu0  ;;  %v372_v7 = vsel %vm324_vm1, %v365_v5, -inf }
 0x155   : > { %373 = vmax.xlane.f32.xlu0 %v372_v7  ;;  %v368_v8 = vpop.f32.mrb[2].mxu0 }
 0x156   : > { %v1121_v9 = vpop.f32.mrb[3].mxu0 }
 0x1e2   : > { %v374_v14 = vpop.xlane.xlu0 %373 }
 0x1e3   : > { %v375_v15 = vmax.f32 %v371_v13, %v374_v14 }
 0x1e5   : > { %v376_v16 = vsub.f32 %v371_v13, %v375_v15  ;;  %452 = vst.msk [vmem:[#allocation2] sm:$0xff] %vm310_vm2, %v375_v15  ;;  %381 = vperm.xlu0 %1246, %v375_v15  }
 0x1e7   : > { %v377_v53 = vmul.f32 1.442695, %v376_v16 }
 0x264   : > { %v382_v19 = vpop.permute.xlu0 %381 }
 0x265   : > { %v384_v20 = vsub.f32 %v365_v5, %v382_v19 }
 0x267   : > { %v385_v21 = vmul.f32 1.442695, %v384_v20 }
 0x269   : > { %1250 = vpow2.f32 %v385_v21 }
 0x26a   : > { %1252 = vpow2.f32 %v377_v53 }
 0x273   : > { %v1729_v24 = vpop.eup %1250 }
 0x274   : > { %v395_v26 = vpack.c.bf16 %v1729_v24, %v1729_v24  ;;  %v1771_v62 = vpop.eup %1252  ;;  %v389_v4 = vsel %vm324_vm1, %v1729_v24, 0.0 }
 0x276   : > { %1125 = vmatmul.mubr.msk.bf16.vlgmr.msra.gmra.mrb[0].mxu1 %vm324_vm1, %v395_v26 }
 0x277   : > { %1129 = vmatpush3.bf16.xpose.msra.mxu1 %v467_v25  ;;  %1130 = vmatprep.mubr.msk.bf16.mxu1 %vm1456_vm0, %v1455_v0 }
 0x278   : > { %1140 = vmatprep.subr.bf16.mxu1 %v1455_v0 }
 0x27e   : > { %1131 = vmatmul.mubr.msk.bf16.vlgmr.msra.gmra.mrb[4].mxu1 %vm324_vm1, %v457_v23 }
 0x27f   : > { %1141 = vmatpush3.bf16.xpose.msra.mxu1 %v609_v29  ;;  %1142 = vmatprep.mubr.msk.bf16.mxu1 %vm1456_vm0, %v1455_v0 }
 0x280   : > { %1152 = vmatprep.subr.bf16.mxu1 %v1455_v0 }
 0x286   : > { %1143 = vmatmul.mubr.msk.bf16.vlgmr.msra.gmra.mrb[8].mxu1 %vm324_vm1, %v602_v28 }
 0x287   : > { %1153 = vmatpush3.bf16.xpose.msra.mxu1 %v748_v31  ;;  %1154 = vmatprep.mubr.msk.bf16.mxu1 %vm1456_vm0, %v1455_v0 }
 0x28e   : > { %1155 = vmatmul.mubr.msk.bf16.vlgmr.msra.gmra.mrb[12].mxu1 %vm324_vm1, %v741_v32 }
 0x349   : > { %v1748_v33 = vpop.f32.mrb[0].mxu1 }
 0x34a   : > { %v1126_v34 = vpop.f32.mrb[1].mxu1 }
 0x34b   : > { %v440_v35 = vpop.f32.mrb[2].mxu1 }
 0x34c   : > { %v1127_v36 = vpop.f32.mrb[3].mxu1 }
 0x351   : > { %v503_v37 = vpop.f32.mrb[4].mxu1 }
 0x352   : > { %v1132_v38 = vpop.f32.mrb[5].mxu1  ;;  %v511_v39 = vsel %vm324_vm1, %v503_v37, -inf }
 0x353   : > { %512 = vmax.xlane.f32.xlu1 %v511_v39  ;;  %v506_v40 = vpop.f32.mrb[6].mxu1 }
 0x354   : > { %v1133_v41 = vpop.f32.mrb[7].mxu1 }
 0x359   : > { %v645_v42 = vpop.f32.mrb[8].mxu1 }
 0x35a   : > { %v1144_v43 = vpop.f32.mrb[9].mxu1  ;;  %v653_v44 = vsel %vm324_vm1, %v645_v42, -inf }
 0x35b   : > { %654 = vmax.xlane.f32.xlu0 %v653_v44  ;;  %v648_v45 = vpop.f32.mrb[10].mxu1 }
 0x35c   : > { %v1145_v46 = vpop.f32.mrb[11].mxu1  ;;  %v669_v45 = vld [vmem:[#allocation3 + $0x10] sm:$0xff] }
 0x361   : > { %v784_v47 = vpop.f32.mrb[12].mxu1 }
 0x362   : > { %v1156_v48 = vpop.f32.mrb[13].mxu1  ;;  %v792_v49 = vsel %vm324_vm1, %v784_v47, -inf }
 0x363   : > { %793 = vmax.xlane.f32.xlu1 %v792_v49  ;;  %v787_v50 = vpop.f32.mrb[14].mxu1 }
 0x364   : > { %v1157_v51 = vpop.f32.mrb[15].mxu1  ;;  %v808_v50 = vld [vmem:[#allocation3 + $0x18] sm:$0xff] }
 0x3e0   : > { %v513_v54 = vpop.xlane.xlu1 %512 }
 0x3e1   : > { %v1756_v55 = vmax.f32 %v1753_v52, %v513_v54 }
 0x3e3   : > { %v515_v57 = vsub.f32 %v1753_v52, %v1756_v55  ;;  %600 = vst.msk [vmem:[#allocation2 + $0x8] sm:$0xff] %vm310_vm2, %v1756_v55  ;;  %520 = vperm.xlu1 %1247, %v1756_v55  }
 0x3e5   : > { %v516_v30 = vmul.f32 1.442695, %v515_v57 }
 0x3e7   : > { %538 = vrot.lane.b32.xlu1 %v1090_v56, %s1459_s18 }
 0x3e8   : > { %v655_v59 = vpop.xlane.xlu0 %654 }
 0x3e9   : > { %v656_v60 = vmax.f32 %v1763_v58, %v655_v59 }
 0x3eb   : > { %v657_v61 = vsub.f32 %v1763_v58, %v656_v60  ;;  %739 = vst.msk [vmem:[#allocation2 + $0x10] sm:$0xff] %vm310_vm2, %v656_v60  ;;  %662 = vperm.xlu0 %1246, %v656_v60  }
 0x3ed   : > { %v658_v32 = vmul.f32 1.442695, %v657_v61 }
 0x3ef   : > { %446 = vperm.xlu0 %1246, %v1771_v62  }
 0x3f0   : > { %v794_v1 = vpop.xlane.xlu1 %793 }
 0x3f1   : > { %v1777_v2 = vmax.f32 %v1773_v63, %v794_v1 }
 0x3f3   : > { %v796_v3 = vsub.f32 %v1773_v63, %v1777_v2  ;;  %878 = vst.msk [vmem:[#allocation2 + $0x18] sm:$0xff] %vm310_vm2, %v1777_v2  ;;  %801 = vperm.xlu1 %1247, %v1777_v2  }
 0x3f5   : > { %v797_v41 = vmul.f32 1.442695, %v796_v3 }
 0x3f7   : > { %677 = vrot.lane.b32.xlu1 %v1090_v56, %s1460_s24 }
 0x3fb   : > { %816 = vrot.lane.b32.xlu1 %v1090_v56, %s1461_s7 }
 0x41f   : > { %390 = vadd.xlane.f32.xlu1 %v389_v4 }
 0x462   : > { %v521_v5 = vpop.permute.xlu1 %520 }
 0x463   : > { %v523_v6 = vsub.f32 %v503_v37, %v521_v5  ;;  %v387_v37 = vld [vmem:[#allocation3] sm:$0xff] }
 0x464   : > { %v388_v38 = vmul.f32 %v1771_v62, %v387_v37 }
 0x465   : > { %v524_v7 = vmul.f32 1.442695, %v523_v6 }
 0x466   : > { %v539_v8 = vpop.permute.xlu1 %538 }
 0x467   : > { %1254 = vpow2.f32 %v524_v7  ;;  %v544_v9 = vsel %vm399_vm3, %v539_v8, 0 }
 0x468   : > { %1135 = vmatpush3.bf16.msra.mxu0 %v544_v9 }
 0x469   : > { %1146 = vmatprep.subr.bf16.mxu0 %v1455_v0 }
 0x46a   : > { %v663_v10 = vpop.permute.xlu0 %662 }
 0x46b   : > { %v665_v11 = vsub.f32 %v645_v42, %v663_v10 }
 0x46d   : > { %v666_v13 = vmul.f32 1.442695, %v665_v11 }
 0x46e   : > { %v447_v14 = vpop.permute.xlu0 %446 }
 0x46f   : > { %1256 = vpow2.f32 %v666_v13  ;;  %v449_v15 = vmul.f32 %v447_v14, %v443_v12 }
 0x471   : > { %v1255_v16 = vpop.eup %1254  ;;  %v450_v17 = vadd.f32 %v449_v15, %v1748_v33 }
 0x472   : > { %v802_v18 = vpop.permute.xlu1 %801  ;;  %v529_v19 = vsel %vm324_vm1, %v1255_v16, 0.0  ;;  %v534_v20 = vpack.c.bf16 %v1255_v16, %v1255_v16 }
 0x473   : > { %451 = vst.msk [vmem:[#allocation4] sm:$0xff] %vm324_vm1, %v450_v17  ;;  %v804_v21 = vsub.f32 %v784_v47, %v802_v18  ;;  %530 = vadd.xlane.f32.xlu0 %v529_v19 }
 0x474   : > { %1137 = vmatmul.mubr.msk.bf16.vlgmr.msra.gmra.mrb[4].mxu0 %vm324_vm1, %v534_v20 }
 0x475   : > { %v805_v22 = vmul.f32 1.442695, %v804_v21  ;;  %1148 = vmatprep.mubr.msk.bf16.mxu0 %vm1456_vm0, %v1455_v0 }
 0x476   : > { %v678_v23 = vpop.permute.xlu1 %677 }
 0x477   : > { %1258 = vpow2.f32 %v805_v22  ;;  %v683_v24 = vsel %vm399_vm3, %v678_v23, 0 }
 0x478   : > { %1147 = vmatpush3.bf16.msra.mxu0 %v683_v24  ;;  %1260 = vpow2.f32 %v516_v30 }
 0x479   : > { %v1257_v25 = vpop.eup %1256  ;;  %1158 = vmatprep.subr.bf16.mxu0 %v1455_v0  ;;  %1262 = vpow2.f32 %v658_v32 }
 0x47a   : > { %v671_v26 = vsel %vm324_vm1, %v1257_v25, 0.0  ;;  %v676_v27 = vpack.c.bf16 %v1257_v25, %v1257_v25  ;;  %v817_v28 = vpop.permute.xlu1 %816  ;;  %1264 = vpow2.f32 %v797_v41  ;;  %v586_v12 = vld [vmem:[#allocation4] sm:$0xff] }
 0x47b   : > { %672 = vadd.xlane.f32.xlu1 %v671_v26  ;;  %v822_v29 = vsel %vm399_vm3, %v817_v28, 0 }
 0x47c   : > { %1149 = vmatmul.mubr.msk.bf16.vlgmr.msra.gmra.mrb[8].mxu0 %vm324_vm1, %v676_v27 }
 0x47d   : > { %1159 = vmatpush3.bf16.msra.mxu0 %v822_v29  ;;  %1160 = vmatprep.mubr.msk.bf16.mxu0 %vm1456_vm0, %v1455_v0  ;;  %v527_v0 = vld [vmem:[#allocation3 + $0x8] sm:$0xff] }
 0x481   : > { %v1259_v31 = vpop.eup %1258 }
 0x482   : > { %v810_v33 = vsel %vm324_vm1, %v1259_v31, 0.0  ;;  %v815_v34 = vpack.c.bf16 %v1259_v31, %v1259_v31  ;;  %v1261_v35 = vpop.eup %1260 }
 0x483   : > { %811 = vadd.xlane.f32.xlu0 %v810_v33  ;;  %v1263_v36 = vpop.eup %1262  ;;  %v528_v42 = vmul.f32 %v1261_v35, %v527_v0 }
 0x484   : > { %1161 = vmatmul.mubr.msk.bf16.vlgmr.msra.gmra.mrb[12].mxu0 %vm324_vm1, %v815_v34  ;;  %v670_v46 = vmul.f32 %v1263_v36, %v669_v45  ;;  %v1265_v49 = vpop.eup %1264 }
 0x485   : > { %v809_v51 = vmul.f32 %v1265_v49, %v808_v50 }
 0x48c   : > { %589 = vperm.xlu1 %1247, %v1261_v35  }
 0x490   : > { %728 = vperm.xlu1 %1247, %v1263_v36  }
 0x4ac   : > { %v391_v39 = vpop.xlane.xlu1 %390 }
 0x4ad   : > { %v392_v40 = vadd.f32 %v391_v39, %v388_v38 }
 0x4af   : > { %394 = vst.msk [vmem:[#allocation3] sm:$0xff] %vm310_vm2, %v392_v40 }
 0x4b6   : > { %v882_v54 = vld [vmem:[#allocation3] sm:$0xff] }
 0x4b7   : > { %1266 = vrcp.f32 %v882_v54 }
 0x4c1   : > { %v1267_v62 = vpop.eup %1266 }
 0x500   : > { %v531_v43 = vpop.xlane.xlu0 %530 }
 0x501   : > { %v532_v44 = vadd.f32 %v531_v43, %v528_v42 }
 0x503   : > { %533 = vst.msk [vmem:[#allocation3 + $0x8] sm:$0xff] %vm310_vm2, %v532_v44 }
 0x508   : > { %v673_v47 = vpop.xlane.xlu1 %672 }
 0x509   : > { %v674_v48 = vadd.f32 %v673_v47, %v670_v46 }
 0x50a   : > { %v883_v55 = vld [vmem:[#allocation3 + $0x8] sm:$0xff] }
 0x50b   : > { %675 = vst.msk [vmem:[#allocation3 + $0x10] sm:$0xff] %vm310_vm2, %v674_v48  ;;  %1268 = vrcp.f32 %v883_v55 }
 0x50c   : > { %v590_v11 = vpop.permute.xlu1 %589 }
 0x50d   : > { %v592_v13 = vmul.f32 %v590_v11, %v586_v12 }
 0x510   : > { %v812_v52 = vpop.xlane.xlu0 %811  ;;  %v729_v16 = vpop.permute.xlu1 %728 }
 0x511   : > { %v813_v53 = vadd.f32 %v812_v52, %v809_v51 }
 0x512   : > { %v884_v56 = vld [vmem:[#allocation3 + $0x10] sm:$0xff] }
 0x513   : > { %814 = vst.msk [vmem:[#allocation3 + $0x18] sm:$0xff] %vm310_vm2, %v813_v53  ;;  %1270 = vrcp.f32 %v884_v56 }
 0x515   : > { %v1269_v3 = vpop.eup %1268 }
 0x51a   : > { %v885_v61 = vld [vmem:[#allocation3 + $0x18] sm:$0xff] }
 0x51b   : > { %1272 = vrcp.f32 %v885_v61 }
 0x51d   : > { %v1271_v5 = vpop.eup %1270 }
 0x525   : > { %v1273_v10 = vpop.eup %1272 }
 0x547   : > { %v580_v57 = vpop.f32.mrb[4].mxu0 }
 0x548   : > { %v1138_v58 = vpop.f32.mrb[5].mxu0  ;;  %594 = vrot.lane.b32.xlu0 %v580_v57, %s1462_s10 }
 0x549   : > { %v583_v59 = vpop.f32.mrb[6].mxu0 }
 0x54a   : > { %v1139_v60 = vpop.f32.mrb[7].mxu0 }
 0x54c   : > { %867 = vperm.xlu0 %1246, %v1265_v49  }
 0x54f   : > { %v719_v63 = vpop.f32.mrb[8].mxu0 }
 0x550   : > { %v1150_v1 = vpop.f32.mrb[9].mxu0  ;;  %733 = vrot.lane.b32.xlu1 %v719_v63, %s1463_s6  ;;  %892 = vperm.xlu0 %1246, %v1267_v62  }
 0x551   : > { %v722_v2 = vpop.f32.mrb[10].mxu0 }
 0x552   : > { %v1151_v4 = vpop.f32.mrb[11].mxu0 }
 0x554   : > { %897 = vperm.xlu1 %1247, %v1269_v3   ;;  %902 = vperm.xlu0 %1246, %v1271_v5  }
 0x557   : > { %v858_v6 = vpop.f32.mrb[12].mxu0 }
 0x558   : > { %v1162_v7 = vpop.f32.mrb[13].mxu0  ;;  %872 = vrot.lane.b32.xlu1 %v858_v6, %s1464_s9 }
 0x559   : > { %v861_v8 = vpop.f32.mrb[14].mxu0 }
 0x55a   : > { %v1163_v9 = vpop.f32.mrb[15].mxu0 }
 0x55c   : > { %907 = vperm.xlu1 %1247, %v1273_v10  }
 0x5ba   : > { %v595_v14 = vpop.permute.xlu0 %594 }
 0x5bb   : > { %v597_v15 = vadd.f32 %v595_v14, %v592_v13 }
 0x5bd   : > { %599 = vst.msk [vmem:[#allocation4] sm:$0xff] %vm598_vm5, %v597_v15 }
 0x5c2   : > { %v734_v19 = vpop.permute.xlu1 %733 }
 0x5c4   : > { %v725_v17 = vld [vmem:[#allocation4] sm:$0xff] }
 0x5c5   : > { %v731_v18 = vmul.f32 %v729_v16, %v725_v17 }
 0x5c7   : > { %v736_v20 = vadd.f32 %v734_v19, %v731_v18 }
 0x5c9   : > { %738 = vst.msk [vmem:[#allocation4] sm:$0xff] %vm737_vm6, %v736_v20 }
 0x5cb   : > { %v868_v21 = vpop.permute.xlu0 %867 }
 0x5cf   : > { %v893_v25 = vpop.permute.xlu0 %892 }
 0x5d0   : > { %v864_v22 = vld [vmem:[#allocation4] sm:$0xff] }
 0x5d1   : > { %v870_v24 = vmul.f32 %v868_v21, %v864_v22 }
 0x5d3   : > { %v898_v23 = vpop.permute.xlu1 %897  ;;  %v903_v29 = vpop.permute.xlu0 %902 }
 0x5d4   : > { %v910_v28 = vsel %vm324_vm1, %v893_v25, %v898_v23 }
 0x5d5   : > { %v912_v31 = vsel %vm911_vm8, %v910_v28, %v903_v29 }
 0x5d7   : > { %v873_v26 = vpop.permute.xlu1 %872 }
 0x5d8   : > { %v875_v27 = vadd.f32 %v873_v26, %v870_v24 }
 0x5da   : > { %877 = vst.msk [vmem:[#allocation4] sm:$0xff] %vm876_vm7, %v875_v27 }
 0x5db   : > { %v908_v30 = vpop.permute.xlu1 %907 }
 0x5dc   : > { %v914_v32 = vsel %vm913_vm9, %v912_v31, %v908_v30 }
 0x5e1   : > { %v915_v33 = vld [vmem:[#allocation4] sm:$0xff] }
 0x5e2   : > { %v916_v34 = vmul.f32 %v915_v33, %v914_v32 }
 0x5e4   : > { %918 = vst.msk [vmem:[%s304_s30] sm:$0xff] %vm319_vm4, %v916_v34 }
 0x5e5   : > { %1377 = shalt.err (!%p1374_p13)
}
 0x5e6   : > { %s1378_s21 = scalar_lea.hbm %s1822_s23, 128  ;;  %s1382_s18 = scalar_lea.hbm %s1875_s3, 256 }
 0x5e7   : > { %p1379_p11 = scmp.ne.s32.totalorder %s1822_s23, %s1378_s21  ;;  %p1383_p7 = scmp.lt.u32.totalorder %s1822_s23, %s1875_s3 }
 0x5e8   : > { %p1384_p3 = scmp.lt.u32.totalorder %s1382_s18, %s1378_s21  ;;  %p1386_p4 = scmp.lt.u32.totalorder %s1378_s21, %s1822_s23 }
 0x5e9   : > { %p1380_p2 = pnand %p1379_p11, %p1898_p10 }
 0x5ea   : > { %p1385_p0 = por %p1384_p3, %p1383_p7 }
 0x5eb   : > { %p1381_p5 = pneg %p1380_p2 }
 0x5ec   : > { %p1387_p12 = por %p1386_p4, %p1385_p0 }
 0x5ee   : > { %p1388_p1 = pnand %p1387_p12, %p1381_p5 }
 0x5f0   : > { %1391 = shalt.err (!%p1388_p1)
}
 0x5f1   : > { %1170 = dma.vmem_to_hbm [thread:$0]  (%p1898_p10), %s1824_s1, 128, %s1822_s23, %s920_s8  }
 0x5f2 PF: > { %s947_s20 = sand.u32 1, %s1430_s12   ;;  %p1899_p8 = scmp.ne.s32.totalorder %s1888_s27, 0 }
 0x5f3   : > { %p1900_p9 = scmp.ge.s32.totalorder %s1450_s17, 2  ;;  %s948_s10 = scalar_lea.sflag [#allocation7], %s947_s20 }
 0x5f5   : > { %p1183_p6 = pnand %p1900_p9, %p1899_p8 }
 0x5f7   : > { %1425 = dma.done.wait (!%p1183_p6), %s948_s10, 128  }
 0x5f8   : > { %1427 = vsyncadd (!%p1183_p6), %s948_s10, 4294967168  ;;  %s22_s17 = sadd.s32 1, %s1450_s17   ;;  %s1901_s25 = sld [smem:[#allocation17_spill]] }
 0x5f9   : > { %p19_p13 = scmp.ge.s32.totalorder %s22_s17, 4   ;;  %s1902_s15 = sld [smem:[#allocation15_spill]] }
 0x5fa   : > { %s1903_s16 = sld [smem:[#allocation16_spill]]  ;;  %s1904_s12 = smov %s1434_s13 }
 0x5fb   : > { %s1905_s13 = smov %s1438_s14  ;;  %21 = sbr.rel (!%p19_p13) target bundleno = 10 (0xa), region = 115 }
 0x5fe   : > { %s1906_s14 = smov %s1901_s25 }
 0x602   :  { %953 = vsyncpa [#allocation6], 1 }
 0x603   :  { %955 = vsyncpa [#allocation6 + $0x1], 1 }
 0x604   :  { %956 = vsyncpa [#allocation9], 1 }
 0x605   :  { %958 = vsyncpa [#allocation9 + $0x1], 1 }
 0x606   :  { %959 = vsyncpa [#allocation7], 1 }
 0x607   :  { %961 = vsyncpa [#allocation7 + $0x1], 1 }

</bundles_post_ra>
